<compile_context>
chip_gen: v5e
topology: v5e:2x2
jax: 0.10.0
libtpu: 0.0.40
codegen_flags: <defaults>
</compile_context>

<pallas_src>
import functools

import jax
import jax.numpy as jnp
from jax.experimental import pallas as pl
from jax.experimental.pallas import tpu as pltpu


def _round_up(x, m):
    return ((x + m - 1) // m) * m


def _vmem_capacity_bytes():
    try:
        return int(pltpu.get_tpu_info().vmem_capacity_bytes)
    except Exception:
        pass
    try:
        kind = jax.devices()[0].device_kind.lower()
        if "v7" in kind:
            return 64 * 1024 * 1024
        return 128 * 1024 * 1024
    except Exception:
        return 64 * 1024 * 1024


def _default_core_splits():
    try:
        kind = jax.devices()[0].device_kind.lower()
        if "v7" in kind:          # 2 TensorCores per chip
            return 2
    except Exception:
        pass
    return 1


def _pick_block_rows(B, C, itemsize, vmem_cap):
    # Working set per batch row (bytes):
    #   inputs : 2 logit tensors x 2 pipeline buffers x C x itemsize
    #   temps  : ~5 live (tb, C) float32 arrays inside the kernel
    per_row = C * (4 * itemsize + 5 * 4) + 64
    budget = int(vmem_cap * 0.55)            # headroom for compiler scratch
    tb = (budget // per_row) // 8 * 8
    tb = max(8, min(tb, 2048, _round_up(B, 8)))
    return tb


def _soft_distill_kernel(student_ref, teacher_ref, labels_ref, out_ref,
                         kd_acc_ref, ce_acc_ref,
                         *, T, soft_w, ce_w, inv_batch, tb, valid_rows,
                         need_mask):
    c = pl.program_id(0)
    i = pl.program_id(1)
    n_inner = pl.num_programs(1)

    @pl.when(i == 0)
    def _():
        kd_acc_ref[...] = jnp.zeros_like(kd_acc_ref)
        ce_acc_ref[...] = jnp.zeros_like(ce_acc_ref)

    s = student_ref[...].astype(jnp.float32)     # (TB, C)
    t = teacher_ref[...].astype(jnp.float32)     # (TB, C)
    lab = labels_ref[...]                        # (TB, 1) int32

    inv_T = 1.0 / T

    # ---- student: share max / shift between tempered and raw softmax ----
    s_max = jnp.max(s, axis=-1, keepdims=True)           # (TB, 1)
    d = s - s_max                                         # (TB, C)
    s_sh = d if T == 1.0 else d * inv_T                   # (TB, C)
    log_zs = jnp.log(jnp.sum(jnp.exp(s_sh), axis=-1, keepdims=True))  # (TB,1)

    # ---- teacher softmax statistics; soft_targets never materialized ----
    t_max = jnp.max(t, axis=-1, keepdims=True)
    t_sh = (t - t_max) if T == 1.0 else (t - t_max) * inv_T
    t_exp = jnp.exp(t_sh)
    t_sum = jnp.sum(t_exp, axis=-1, keepdims=True)

    # per-row KD: (1/Z_t) * sum_c e^{t_sh} * ((t_sh - s_sh) + log Z_s) - log Z_t
    kd_row = (jnp.sum(t_exp * ((t_sh - s_sh) + log_zs), axis=-1, keepdims=True)
              * pl.reciprocal(t_sum, approx=False)) - jnp.log(t_sum)   # (TB,1)

    # ---- cross-entropy on raw student logits, no full log_probs tensor ----
    col = jax.lax.broadcasted_iota(jnp.int32, s.shape, 1)              # class ids
    s_lab = jnp.sum(jnp.where(col == lab, s, 0.0), axis=-1, keepdims=True)
    log_z_raw = log_zs if T == 1.0 else jnp.log(
        jnp.sum(jnp.exp(d), axis=-1, keepdims=True))
    ce_row = s_max + log_z_raw - s_lab                                 # (TB,1)

    if need_mask:  # discard padded / re-read tail rows (select, not multiply)
        block_idx = c * n_inner + i
        row = jax.lax.broadcasted_iota(jnp.int32, (tb, 1), 0) + block_idx * tb
        valid = row < valid_rows
        kd_row = jnp.where(valid, kd_row, 0.0)
        ce_row = jnp.where(valid, ce_row, 0.0)

    kd_acc_ref[...] += kd_row
    ce_acc_ref[...] += ce_row

    @pl.when(i == n_inner - 1)
    def _():
        kd = jnp.sum(kd_acc_ref[...])
        ce = jnp.sum(ce_acc_ref[...])
        partial = (soft_w * (T * T) * kd + ce_w * ce) * inv_batch
        out_ref[...] = jnp.full(out_ref.shape, partial, jnp.float32)


def soft_distillation_loss(student_logits, teacher_logits, labels,
                           soft_target_loss_weight=0.5, ce_loss_weight=0.5,
                           T=1.0, block_rows=None, core_splits=None):
    B, C = student_logits.shape
    itemsize = jnp.dtype(student_logits.dtype).itemsize
    vmem_cap = _vmem_capacity_bytes()

    if block_rows is None:
        tb = _pick_block_rows(B, C, itemsize, vmem_cap)
    else:
        tb = min(_round_up(max(1, int(block_rows)), 8), _round_up(B, 8))

    nb = int(pl.cdiv(B, tb))                       # number of real batch blocks
    if core_splits is None:
        core_splits = _default_core_splits()
    num_par = max(1, min(int(core_splits), nb))    # leading "parallel" axis
    inner_steps = int(pl.cdiv(nb, num_par))
    need_mask = (num_par * inner_steps * tb) != B

    labels2d = labels.reshape(B, 1).astype(jnp.int32)

    per_row = C * (4 * itemsize + 5 * 4) + 64
    vmem_limit = int(min(vmem_cap,
                         max(int(tb * per_row * 1.25), 32 * 1024 * 1024)))

    kernel = functools.partial(
        _soft_distill_kernel,
        T=float(T),
        soft_w=float(soft_target_loss_weight),
        ce_w=float(ce_loss_weight),
        inv_batch=1.0 / float(B),
        tb=tb,
        valid_rows=B,
        need_mask=need_mask,
    )

    def in_map(cix, iix):
        # clamp so blocks past the real batch re-read the last block; their
        # contribution is masked to zero inside the kernel.
        return (jnp.minimum(cix * inner_steps + iix, nb - 1), 0)

    out = pl.pallas_call(
        kernel,
        out_shape=jax.ShapeDtypeStruct((num_par, 8, 128), jnp.float32),
        grid=(num_par, inner_steps),
        in_specs=[
            pl.BlockSpec((tb, C), in_map),         # student logits tile
            pl.BlockSpec((tb, C), in_map),         # teacher logits tile
            pl.BlockSpec((tb, 1), in_map),         # labels tile
        ],
        out_specs=pl.BlockSpec((1, 8, 128), lambda cix, iix: (cix, 0, 0)),
        scratch_shapes=[
            pltpu.VMEM((tb, 1), jnp.float32),      # kd per-row accumulator
            pltpu.VMEM((tb, 1), jnp.float32),      # ce per-row accumulator
        ],
        compiler_params=pltpu.CompilerParams(
            dimension_semantics=("parallel", "arbitrary"),
            vmem_limit_bytes=vmem_limit),
    )(student_logits, teacher_logits, labels2d)

    return jnp.sum(out[:, 0, 0])


def _reference(student, teacher, labels, soft_w=0.5, ce_w=0.5, T=1.0):
    # plain-JAX reference mirroring the PyTorch forward
    soft_targets = jax.nn.softmax(teacher / T, axis=-1)
    soft_prob = jax.nn.log_softmax(student / T, axis=-1)
    kd = jnp.sum(soft_targets * (jnp.log(soft_targets) - soft_prob)) \
         / student.shape[0] * T ** 2
    logp = jax.nn.log_softmax(student, axis=-1)
    ce = -jnp.mean(jnp.take_along_axis(logp, labels[:, None], axis=-1))
    return soft_w * kd + ce_w * ce


if __name__ == "__main__":
    key = jax.random.PRNGKey(0)
    k1, k2, k3, k4, k5, k6, k7, k8, k9 = jax.random.split(key, 9)

    # ---- Test 1: f32 logits, T=2.0, single tile, auto tiling/core split ----
    B, C, T = 8, 128, 2.0
    student = jax.random.normal(k1, (B, C), dtype=jnp.float32)
    teacher = jax.random.normal(k2, (B, C), dtype=jnp.float32)
    labels = jax.random.randint(k3, (B,), 0, C, dtype=jnp.int32)

    loss = jax.block_until_ready(
        soft_distillation_loss(student, teacher, labels,
                               soft_target_loss_weight=0.5,
                               ce_loss_weight=0.5, T=T))
    ref = _reference(student, teacher, labels, 0.5, 0.5, T)
    assert jnp.allclose(loss, ref, rtol=1e-5, atol=1e-4), (loss, ref)

    # ---- Test 2: bf16 logits, T=1.0 specialization, ragged batch (40 rows,
    #      16-row tiles, no host-side padding) and a 2-way core split (also
    #      correct on 1-TC chips: the parallel axis becomes an outer loop) ----
    B2, C2, T2 = 40, 256, 1.0
    student2 = jax.random.normal(k4, (B2, C2), dtype=jnp.bfloat16)
    teacher2 = jax.random.normal(k5, (B2, C2), dtype=jnp.bfloat16)
    labels2 = jax.random.randint(k6, (B2,), 0, C2, dtype=jnp.int32)

    loss2 = jax.block_until_ready(
        soft_distillation_loss(student2, teacher2, labels2,
                               soft_target_loss_weight=0.3,
                               ce_loss_weight=0.7, T=T2,
                               block_rows=16, core_splits=2))
    ref2 = _reference(student2.astype(jnp.float32),
                      teacher2.astype(jnp.float32), labels2, 0.3, 0.7, T2)
    assert jnp.allclose(loss2, ref2, rtol=1e-4, atol=1e-4), (loss2, ref2)

    # ---- Test 3: f32, T=4.0 (separate raw-CE logZ path), ragged multi-step ----
    B3, C3, T3 = 20, 128, 4.0
    student3 = jax.random.normal(k7, (B3, C3), dtype=jnp.float32)
    teacher3 = jax.random.normal(k8, (B3, C3), dtype=jnp.float32)
    labels3 = jax.random.randint(k9, (B3,), 0, C3, dtype=jnp.int32)

    loss3 = jax.block_until_ready(
        soft_distillation_loss(student3, teacher3, labels3,
                               soft_target_loss_weight=0.6,
                               ce_loss_weight=0.4, T=T3, block_rows=8))
    ref3 = _reference(student3, teacher3, labels3, 0.6, 0.4, T3)
    assert jnp.allclose(loss3, ref3, rtol=1e-5, atol=1e-4), (loss3, ref3)

    print("KERNEL_OK")
</pallas_src>

<mosaic_0001>
module attributes {stable_mosaic.version = 11 : i64} {
  func.func @_soft_distill_kernel(%arg0: i32, %arg1: i32, %arg2: memref<8x128xf32, #tpu.memory_space<vmem>>, %arg3: memref<8x128xf32, #tpu.memory_space<vmem>>, %arg4: memref<8x1xi32, #tpu.memory_space<vmem>>, %arg5: memref<1x8x128xf32, #tpu.memory_space<vmem>>, %arg6: memref<8x1xf32, #tpu.memory_space<vmem>>, %arg7: memref<8x1xf32, #tpu.memory_space<vmem>>) attributes {dimension_semantics = [#tpu.dimension_semantics<parallel>, #tpu.dimension_semantics<arbitrary>], iteration_bounds = array<i64: 1, 1>, scalar_prefetch = 0 : i64, scratch_operands = 2 : i64, tpu.core_type = #tpu.core_type<tc>, window_params = [{transform_indices = @transform_0, window_bounds = array<i64: 8, 128>}, {transform_indices = @transform_1, window_bounds = array<i64: 8, 128>}, {transform_indices = @transform_2, window_bounds = array<i64: 8, 1>}, {transform_indices = @transform_3, window_bounds = array<i64: 1, 8, 128>}]} {
    %c0_i32 = arith.constant 0 : i32
    %0 = arith.cmpi eq, %arg1, %c0_i32 : i32
    %1 = arith.extui %0 : i1 to i32
    %c0_i32_0 = arith.constant 0 : i32
    %2 = arith.cmpi ne, %1, %c0_i32_0 : i32
    scf.if %2 {
      %cst_25 = arith.constant 0.000000e+00 : f32
      %57 = vector.broadcast %cst_25 : f32 to vector<8x1xf32>
      %c0_26 = arith.constant 0 : index
      %c0_27 = arith.constant 0 : index
      %58 = vector.load %arg6[%c0_26, %c0_27] : memref<8x1xf32, #tpu.memory_space<vmem>>, vector<8x1xf32>
      tpu.vector_store %arg6[%c0_26, %c0_27], %57 {strides = array<i32>} : memref<8x1xf32, #tpu.memory_space<vmem>>, vector<8x1xf32>,
      %cst_28 = arith.constant 0.000000e+00 : f32
      %59 = vector.broadcast %cst_28 : f32 to vector<8x1xf32>
      %c0_29 = arith.constant 0 : index
      %c0_30 = arith.constant 0 : index
      %60 = vector.load %arg7[%c0_29, %c0_30] : memref<8x1xf32, #tpu.memory_space<vmem>>, vector<8x1xf32>
      tpu.vector_store %arg7[%c0_29, %c0_30], %59 {strides = array<i32>} : memref<8x1xf32, #tpu.memory_space<vmem>>, vector<8x1xf32>,
    } else {
    }
    %c0 = arith.constant 0 : index
    %c0_1 = arith.constant 0 : index
    %3 = vector.load %arg2[%c0, %c0_1] : memref<8x128xf32, #tpu.memory_space<vmem>>, vector<8x128xf32>
    %c0_2 = arith.constant 0 : index
    %c0_3 = arith.constant 0 : index
    %4 = vector.load %arg3[%c0_2, %c0_3] : memref<8x128xf32, #tpu.memory_space<vmem>>, vector<8x128xf32>
    %c0_4 = arith.constant 0 : index
    %c0_5 = arith.constant 0 : index
    %5 = vector.load %arg4[%c0_4, %c0_5] : memref<8x1xi32, #tpu.memory_space<vmem>>, vector<8x1xi32>
    %cst = arith.constant dense<0xFF800000> : vector<8xf32>
    %6 = vector.multi_reduction <maximumf>, %3, %cst [1] : vector<8x128xf32> to vector<8xf32>
    %7 = vector.shape_cast %6 : vector<8xf32> to vector<8x1xf32>
    %8 = vector.broadcast %7 : vector<8x1xf32> to vector<8x128xf32>
    %9 = arith.subf %3, %8 : vector<8x128xf32>
    %cst_6 = arith.constant 5.000000e-01 : f32
    %10 = vector.broadcast %cst_6 : f32 to vector<8x128xf32>
    %11 = arith.mulf %9, %10 : vector<8x128xf32>
    %12 = math.exp %11 : vector<8x128xf32>
    %cst_7 = arith.constant dense<0.000000e+00> : vector<8xf32>
    %13 = vector.multi_reduction <add>, %12, %cst_7 [1] : vector<8x128xf32> to vector<8xf32>
    %14 = vector.shape_cast %13 : vector<8xf32> to vector<8x1xf32>
    %15 = math.log %14 : vector<8x1xf32>
    %cst_8 = arith.constant dense<0xFF800000> : vector<8xf32>
    %16 = vector.multi_reduction <maximumf>, %4, %cst_8 [1] : vector<8x128xf32> to vector<8xf32>
    %17 = vector.shape_cast %16 : vector<8xf32> to vector<8x1xf32>
    %18 = vector.broadcast %17 : vector<8x1xf32> to vector<8x128xf32>
    %19 = arith.subf %4, %18 : vector<8x128xf32>
    %cst_9 = arith.constant 5.000000e-01 : f32
    %20 = vector.broadcast %cst_9 : f32 to vector<8x128xf32>
    %21 = arith.mulf %19, %20 : vector<8x128xf32>
    %22 = math.exp %21 : vector<8x128xf32>
    %cst_10 = arith.constant dense<0.000000e+00> : vector<8xf32>
    %23 = vector.multi_reduction <add>, %22, %cst_10 [1] : vector<8x128xf32> to vector<8xf32>
    %24 = vector.shape_cast %23 : vector<8xf32> to vector<8x1xf32>
    %25 = arith.subf %21, %11 : vector<8x128xf32>
    %26 = vector.broadcast %15 : vector<8x1xf32> to vector<8x128xf32>
    %27 = arith.addf %25, %26 : vector<8x128xf32>
    %28 = arith.mulf %22, %27 : vector<8x128xf32>
    %cst_11 = arith.constant dense<0.000000e+00> : vector<8xf32>
    %29 = vector.multi_reduction <add>, %28, %cst_11 [1] : vector<8x128xf32> to vector<8xf32>
    %30 = vector.shape_cast %29 : vector<8xf32> to vector<8x1xf32>
    %31 = tpu.reciprocal %24 : vector<8x1xf32> -> vector<8x1xf32>
    %32 = arith.mulf %30, %31 : vector<8x1xf32>
    %33 = math.log %24 : vector<8x1xf32>
    %34 = arith.subf %32, %33 : vector<8x1xf32>
    %35 = tpu.iota {dimensions = array<i32: 1>} : vector<8x128xi32>
    %36 = vector.broadcast %5 : vector<8x1xi32> to vector<8x128xi32>
    %37 = arith.cmpi eq, %35, %36 : vector<8x128xi32>
    %cst_12 = arith.constant 0.000000e+00 : f32
    %38 = vector.broadcast %cst_12 : f32 to vector<8x128xf32>
    %39 = arith.select %37, %3, %38 : vector<8x128xi1>, vector<8x128xf32>
    %cst_13 = arith.constant dense<0.000000e+00> : vector<8xf32>
    %40 = vector.multi_reduction <add>, %39, %cst_13 [1] : vector<8x128xf32> to vector<8xf32>
    %41 = vector.shape_cast %40 : vector<8xf32> to vector<8x1xf32>
    %42 = math.exp %9 : vector<8x128xf32>
    %cst_14 = arith.constant dense<0.000000e+00> : vector<8xf32>
    %43 = vector.multi_reduction <add>, %42, %cst_14 [1] : vector<8x128xf32> to vector<8xf32>
    %44 = vector.shape_cast %43 : vector<8xf32> to vector<8x1xf32>
    %45 = math.log %44 : vector<8x1xf32>
    %46 = arith.addf %7, %45 : vector<8x1xf32>
    %47 = arith.subf %46, %41 : vector<8x1xf32>
    %c0_15 = arith.constant 0 : index
    %c0_16 = arith.constant 0 : index
    %48 = vector.load %arg6[%c0_15, %c0_16] : memref<8x1xf32, #tpu.memory_space<vmem>>, vector<8x1xf32>
    %49 = arith.addf %48, %34 : vector<8x1xf32>
    %c0_17 = arith.constant 0 : index
    %c0_18 = arith.constant 0 : index
    %50 = vector.load %arg6[%c0_17, %c0_18] : memref<8x1xf32, #tpu.memory_space<vmem>>, vector<8x1xf32>
    tpu.vector_store %arg6[%c0_17, %c0_18], %49 {strides = array<i32>} : memref<8x1xf32, #tpu.memory_space<vmem>>, vector<8x1xf32>,
    %c0_19 = arith.constant 0 : index
    %c0_20 = arith.constant 0 : index
    %51 = vector.load %arg7[%c0_19, %c0_20] : memref<8x1xf32, #tpu.memory_space<vmem>>, vector<8x1xf32>
    %52 = arith.addf %51, %47 : vector<8x1xf32>
    %c0_21 = arith.constant 0 : index
    %c0_22 = arith.constant 0 : index
    %53 = vector.load %arg7[%c0_21, %c0_22] : memref<8x1xf32, #tpu.memory_space<vmem>>, vector<8x1xf32>
    tpu.vector_store %arg7[%c0_21, %c0_22], %52 {strides = array<i32>} : memref<8x1xf32, #tpu.memory_space<vmem>>, vector<8x1xf32>,
    %c0_i32_23 = arith.constant 0 : i32
    %54 = arith.cmpi eq, %arg1, %c0_i32_23 : i32
    %55 = arith.extui %54 : i1 to i32
    %c0_i32_24 = arith.constant 0 : i32
    %56 = arith.cmpi ne, %55, %c0_i32_24 : i32
    scf.if %56 {
      %c0_25 = arith.constant 0 : index
      %c0_26 = arith.constant 0 : index
      %57 = vector.load %arg6[%c0_25, %c0_26] : memref<8x1xf32, #tpu.memory_space<vmem>>, vector<8x1xf32>
      %58 = vector.shape_cast %57 : vector<8x1xf32> to vector<1x8x1xf32>
      %cst_27 = arith.constant dense<0.000000e+00> : vector<1xf32>
      %59 = vector.multi_reduction <add>, %58, %cst_27 [1, 2] : vector<1x8x1xf32> to vector<1xf32>
      %60 = vector.shape_cast %59 : vector<1xf32> to vector<1x1x1xf32>
      %61 = vector.extract %60[0, 0, 0] : f32 from vector<1x1x1xf32>
      %c0_28 = arith.constant 0 : index
      %c0_29 = arith.constant 0 : index
      %62 = vector.load %arg7[%c0_28, %c0_29] : memref<8x1xf32, #tpu.memory_space<vmem>>, vector<8x1xf32>
      %63 = vector.shape_cast %62 : vector<8x1xf32> to vector<1x8x1xf32>
      %cst_30 = arith.constant dense<0.000000e+00> : vector<1xf32>
      %64 = vector.multi_reduction <add>, %63, %cst_30 [1, 2] : vector<1x8x1xf32> to vector<1xf32>
      %65 = vector.shape_cast %64 : vector<1xf32> to vector<1x1x1xf32>
      %66 = vector.extract %65[0, 0, 0] : f32 from vector<1x1x1xf32>
      %cst_31 = arith.constant 2.000000e+00 : f32
      %67 = arith.mulf %cst_31, %61 : f32
      %cst_32 = arith.constant 5.000000e-01 : f32
      %68 = arith.mulf %cst_32, %66 : f32
      %69 = arith.addf %67, %68 : f32
      %cst_33 = arith.constant 1.250000e-01 : f32
      %70 = arith.mulf %69, %cst_33 : f32
      %71 = vector.broadcast %70 : f32 to vector<1x8x128xf32>
      %c0_34 = arith.constant 0 : index
      %c0_35 = arith.constant 0 : index
      %c0_36 = arith.constant 0 : index
      %72 = vector.load %arg5[%c0_34, %c0_35, %c0_36] : memref<1x8x128xf32, #tpu.memory_space<vmem>>, vector<1x8x128xf32>
      tpu.vector_store %arg5[%c0_34, %c0_35, %c0_36], %71 {strides = array<i32>} : memref<1x8x128xf32, #tpu.memory_space<vmem>>, vector<1x8x128xf32>,
    } else {
    }
    return
  }
  func.func @transform_0(%arg0: i32, %arg1: i32) -> (i32, i32) {
    %c1_i32 = arith.constant 1 : i32
    %0 = arith.muli %arg0, %c1_i32 : i32
    %1 = arith.addi %0, %arg1 : i32
    %c0_i32 = arith.constant 0 : i32
    %2 = arith.minsi %1, %c0_i32 : i32
    %c0_i32_0 = arith.constant 0 : i32
    %c0_i32_1 = arith.constant 0 : i32
    return %2, %c0_i32_0 : i32, i32
  }
  func.func @transform_1(%arg0: i32, %arg1: i32) -> (i32, i32) {
    %c1_i32 = arith.constant 1 : i32
    %0 = arith.muli %arg0, %c1_i32 : i32
    %1 = arith.addi %0, %arg1 : i32
    %c0_i32 = arith.constant 0 : i32
    %2 = arith.minsi %1, %c0_i32 : i32
    %c0_i32_0 = arith.constant 0 : i32
    %c0_i32_1 = arith.constant 0 : i32
    return %2, %c0_i32_0 : i32, i32
  }
  func.func @transform_2(%arg0: i32, %arg1: i32) -> (i32, i32) {
    %c1_i32 = arith.constant 1 : i32
    %0 = arith.muli %arg0, %c1_i32 : i32
    %1 = arith.addi %0, %arg1 : i32
    %c0_i32 = arith.constant 0 : i32
    %2 = arith.minsi %1, %c0_i32 : i32
    %c0_i32_0 = arith.constant 0 : i32
    %c0_i32_1 = arith.constant 0 : i32
    return %2, %c0_i32_0 : i32, i32
  }
  func.func @transform_3(%arg0: i32, %arg1: i32) -> (i32, i32, i32) {
    %c0_i32 = arith.constant 0 : i32
    %c0_i32_0 = arith.constant 0 : i32
    %c0_i32_1 = arith.constant 0 : i32
    return %arg0, %c0_i32, %c0_i32_0 : i32, i32, i32
  }
}

</mosaic_0001>

<bundles_post_ra>
// kernel: tpu_custom_call.1
= control target key start
LH: loop header
LB: loop body
LE: loop exit
PB: predicated region body
PF: predicated region fallthrough
CT: control target
= control target key end

     0   :  { %8 = vsyncpa [#allocation5], 0  ;;  %s350_s0 = inlined_call_operand.vmem [shape: f32[8,128], index: 0, kind: input, shape index: {}]   ;;  %s351_s1 = inlined_call_operand.hbm [shape: f32[8,128], index: 1, kind: input, shape index: {}]   ;;  %s352_s2 = inlined_call_operand.vmem [shape: s32[8,1], index: 2, kind: input, shape index: {}]   ;;  %s353_s3 = inlined_call_operand.hbm [shape: f32[1,8,128], index: 3, kind: output, shape index: {}]  }
   0x1   :  { %9 = vsyncpa [#allocation6], 0  ;;  %s32_s14 = sshll.u32 %s351_s1, 4  ;;  %s304_s15 = smov [#allocation4]   ;;  %s33_s14 = int_to_ptr.hbm [resolvable:$true] %s32_s14 }
   0x2   :  { %s34_s16 = sshll.u32 %s304_s15, 4  ;;  %s35_s16 = int_to_ptr.vmem [resolvable:$true] %s34_s16 }
   0x3   :  { %37 = dma.hbm_to_vmem [thread:$0]  %s33_s14, 128, %s35_s16, [#allocation5]  }
   0x4   :  { %300 = dma.done.wait [#allocation5], 128  }
   0x5   :  { %301 = vsyncadd [#allocation5], 4294967168  ;;  %v98_v0 = vld [vmem:[%s350_s0] sm:$0xff]  ;;  %v99_v1 = vld [vmem:[#allocation4] sm:$0xff]  ;;  %v305_v2 = vmov 0   ;;  %vm95_vm0 = vcmask 7168   ;;  %v142_v23 = vlaneseq }
   0x6   :  { %101 = vmax.xlane.f32.xlu0 %v98_v0  ;;  %236 = vset.pattern.permute.xlu1 %v305_v2  ;;  %v100_v16 = vld [vmem:[%s352_s2] sm:$0xff]  ;;  %v306_v17 = vmov 0.0   ;;  %s307_s22 = smov [#allocation7]   ;;  %s204_s27 = sshll.u32 %s353_s3, 4  ;;  %s205_s27 = int_to_ptr.hbm [resolvable:$true] %s204_s27 }
   0x7   :  { %237 = vset.pattern.permute.xlu0 %v305_v2  ;;  %96 = vst.msk [vmem:[#allocation2] sm:$0xff] %vm95_vm0, %v306_v17  ;;  %v143_v24 = vand.u32 127, %v142_v23  ;;  %s202_s23 = sshll.u32 %s307_s22, 4  ;;  %s203_s23 = int_to_ptr.vmem [resolvable:$true] %s202_s23 }
   0x8   :  { %97 = vst.msk [vmem:[#allocation3] sm:$0xff] %vm95_vm0, %v306_v17 }
   0xe   :  { %111 = vmax.xlane.f32.xlu0 %v99_v1  ;;  %v159_v43 = vld [vmem:[#allocation2] sm:$0xff] }
   0xf   :  { %v163_v50 = vld [vmem:[#allocation3] sm:$0xff] }
  0x79   :  { %v334_v3 = vpop.xlane.xlu0 %101 }
  0x7a   :  { %v103_v4 = vsub.f32 %v98_v0, %v334_v3 }
  0x7c   :  { %v104_v5 = vmul.f32 0.5, %v103_v4  ;;  %v151_v13 = vmul.f32 1.442695, %v103_v4 }
  0x7e   :  { %v105_v6 = vmul.f32 1.442695, %v104_v5 }
  0x80   :  { %238 = vpow2.f32 %v105_v6 }
  0x81   :  { %v112_v7 = vpop.xlane.xlu0 %111 }
  0x82   :  { %v113_v8 = vsub.f32 %v99_v1, %v112_v7 }
  0x84   :  { %v114_v9 = vmul.f32 0.5, %v113_v8 }
  0x86   :  { %v239_v10 = vpop.eup %238  ;;  %v115_v11 = vmul.f32 1.442695, %v114_v9  ;;  %v119_v12 = vsub.f32 %v114_v9, %v104_v5 }
  0x87   :  { %107 = vadd.xlane.f32.xlu1 %v239_v10 }
  0x88   :  { %240 = vpow2.f32 %v115_v11 }
  0x89   :  { %242 = vpow2.f32 %v151_v13 }
  0x8e   :  { %v241_v14 = vpop.eup %240 }
  0x8f   :  { %117 = vadd.xlane.f32.xlu2 %v241_v14  ;;  %v243_v15 = vpop.eup %242 }
  0x97   :  { %153 = vadd.xlane.f32.xlu2 %v243_v15 }
  0xa0   :  { %145 = vperm.xlu1 %236, %v100_v16  }
  0xfa   :  { %v108_v18 = vpop.xlane.xlu1 %107 }
  0xfb   :  { %244 = vlog2.f32 %v108_v18 }
 0x101   :  { %v245_v19 = vpop.eup %244 }
 0x102   :  { %v110_v20 = vmul.f32 0.6931472, %v245_v19  ;;  %v118_v27 = vpop.xlane.xlu2 %117 }
 0x103   :  { %246 = vrcp.f32 %v118_v27  ;;  %vm129_vm2 = vweird.f32 %v118_v27  ;;  %v135_v32 = vand.u32 2147483648, %v118_v27  ;;  %v133_v34 = vand.u32 2147483647, %v118_v27 }
 0x104   :  { %v120_v21 = vadd.f32 %v119_v12, %v110_v20  ;;  %248 = vlog2.f32 %v118_v27 }
 0x105   :  { %v136_v37 = vor.u32 1.1754944e-38, %v135_v32  ;;  %vm134_vm5 = vcmp.eq.f32.partialorder %v133_v34, 8.507059e+37 }
 0x106   :  { %v121_v22 = vmul.f32 %v241_v14, %v120_v21 }
 0x108   :  { %122 = vadd.xlane.f32.xlu0 %v121_v22 }
 0x109   :  { %v247_v28 = vpop.eup %246 }
 0x10a   :  { %v125_v29 = vmul.f32 %v247_v28, %v118_v27  ;;  %vm130_vm3 = vweird.f32 %v247_v28  ;;  %v249_v35 = vpop.eup %248  ;;  %v154_v36 = vpop.xlane.xlu2 %153 }
 0x10b   :  { %vm131_vm4 = vmor %vm129_vm2, %vm130_vm3  ;;  %250 = vlog2.f32 %v154_v36  ;;  %v140_v39 = vmul.f32 0.6931472, %v249_v35 }
 0x10c   :  { %v126_v30 = vsub.f32 1.0, %v125_v29 }
 0x10e   :  { %v127_v31 = vmul.f32 %v247_v28, %v126_v30 }
 0x110   :  { %v128_v33 = vadd.f32 %v247_v28, %v127_v31 }
 0x111   :  { %v251_v45 = vpop.eup %250 }
 0x112   :  { %v146_v25 = vpop.permute.xlu1 %145  ;;  %v132_v38 = vsel %vm131_vm4, %v247_v28, %v128_v33  ;;  %v156_v47 = vmul.f32 0.6931472, %v251_v45 }
 0x113   :  { %vm147_vm1 = vcmp.eq.s32.totalorder %v143_v24, %v146_v25  ;;  %v137_v40 = vsel %vm134_vm5, %v136_v37, %v132_v38 }
 0x114   :  { %v148_v26 = vsel %vm147_vm1, %v98_v0, 0.0  ;;  %v157_v48 = vadd.f32 %v156_v47, %v334_v3 }
 0x115   :  { %149 = vadd.xlane.f32.xlu2 %v148_v26 }
 0x17b   :  { %v123_v41 = vpop.xlane.xlu0 %122 }
 0x17c   :  { %v138_v42 = vmul.f32 %v137_v40, %v123_v41 }
 0x17e   :  { %v141_v44 = vsub.f32 %v138_v42, %v140_v39 }
 0x180   :  { %v160_v46 = vadd.f32 %v159_v43, %v141_v44 }
 0x182   :  { %162 = vst.msk [vmem:[#allocation2] sm:$0xff] %vm95_vm0, %v160_v46 }
 0x188   :  { %v150_v49 = vpop.xlane.xlu2 %149 }
 0x189   :  { %v158_v51 = vsub.f32 %v157_v48, %v150_v49  ;;  %v169_v52 = vld [vmem:[#allocation2] sm:$0xff] }
 0x18a   :  { %v170_v53 = vsel %vm95_vm0, %v169_v52, 0.0 }
 0x18b   :  { %v164_v54 = vadd.f32 %v163_v50, %v158_v51  ;;  %171 = vadd.xlane.f32.xlu0 %v170_v53 }
 0x18d   :  { %165 = vst.msk [vmem:[#allocation3] sm:$0xff] %vm95_vm0, %v164_v54 }
 0x194   :  { %v180_v55 = vld [vmem:[#allocation3] sm:$0xff] }
 0x195   :  { %v181_v56 = vsel %vm95_vm0, %v180_v55, 0.0 }
 0x196   :  { %182 = vadd.xlane.f32.xlu2 %v181_v56 }
 0x1fe   :  { %v172_v57 = vpop.xlane.xlu0 %171 }
 0x1ff   :  { %v173_v58 = vrot.slane %v172_v57, 4 }
 0x201   :  { %v174_v59 = vadd.f32 %v173_v58, %v172_v57 }
 0x203   :  { %v175_v60 = vrot.slane %v174_v59, 2 }
 0x205   :  { %v176_v61 = vadd.f32 %v175_v60, %v174_v59 }
 0x207   :  { %v177_v62 = vrot.slane %v176_v61, 1 }
 0x209   :  { %v183_v63 = vpop.xlane.xlu2 %182  ;;  %v178_v0 = vadd.f32 %v177_v62, %v176_v61 }
 0x20a   :  { %v184_v1 = vrot.slane %v183_v63, 4 }
 0x20b   :  { %228 = vpush %v178_v0 }
 0x20c   :  { %v185_v2 = vadd.f32 %v184_v1, %v183_v63 }
 0x20e   :  { %v186_v3 = vrot.slane %v185_v2, 2 }
 0x210   :  { %v187_v4 = vadd.f32 %v186_v3, %v185_v2 }
 0x212   :  { %v188_v5 = vrot.slane %v187_v4, 1 }
 0x214   :  { %v189_v6 = vadd.f32 %v188_v5, %v187_v4 }
 0x216   :  { %230 = vpush %v189_v6 }
 0x23c   :  { %s229_s2 = spop %228 }
 0x23d   :  { %s191_s19 = smul.f32 2.0, %s229_s2 }
 0x247   :  { %s231_s20 = spop %230 }
 0x248   :  { %s192_s21 = smul.f32 0.5, %s231_s20 }
 0x24a   :  { %s193_s24 = sadd.f32 %s192_s21, %s191_s19 }
 0x24c   :  { %s194_s28 = smul.f32 0.125, %s193_s24 }
 0x24e   :  { %v195_v7 = vstv %s194_s28 }
 0x24f   :  { %196 = vst [vmem:[#allocation7] sm:$0xff] %v195_v7 }
 0x250   :  { %207 = dma.vmem_to_hbm [thread:$0]  %s203_s23, 128, %s205_s27, [#allocation6]  }
 0x251   :  { %302 = dma.done.wait [#allocation6], 128  }
 0x252   :  { %303 = vsyncadd [#allocation6], 4294967168 }
 0x253   :  { %212 = vsyncpa [#allocation5], 1 }
 0x254   :  { %213 = vsyncpa [#allocation6], 1 }

</bundles_post_ra>
